<compile_context>
chip_gen: v7x
topology: tpu7x:2x2x1
jax: 0.10.0
libtpu: 0.0.40
codegen_flags: <defaults>
</compile_context>

<pallas_src>
import functools

import jax
import jax.numpy as jnp
from jax.experimental import pallas as pl
from jax.experimental.pallas import tpu as pltpu

LANES = 128  # padded feature width of the hidden layers


def mlp_kernel(x_ref, w_ref, o_ref):
    # x_ref: [tb, 2]   f32 raw input features (no wrapper padding).
    # w_ref: [4, 128, 128] bf16 packed weights; row 127 of each slab is the
    #        bias, and [127,127] = 1.0 on layers 0..2 so the constant-1 lane
    #        (bias channel) survives each matmul + ReLU.
    # o_ref: [tb, 2]   f32 logits.
    x = x_ref[...]  # (tb, 2) f32

    # --- Layer 0 fused on the VPU (only 2 input features): outer-product
    #     broadcast multiply-adds; the bias row sets lane 127 to 1.0.
    w0 = w_ref[0]  # (128, 128) bf16
    a1 = (x[:, 0:1] * w0[0:1, :].astype(jnp.float32)
          + x[:, 1:2] * w0[1:2, :].astype(jnp.float32)
          + w0[LANES - 1:LANES, :].astype(jnp.float32))
    h = jnp.maximum(a1, 0.0)  # (tb, 128) f32; lane 127 == 1.0

    # --- Layers 1..2: bf16 MXU matmuls, f32 accumulation, f32 ReLU.
    h = jnp.maximum(
        jnp.dot(h.astype(jnp.bfloat16), w_ref[1],
                preferred_element_type=jnp.float32), 0.0)
    h = jnp.maximum(
        jnp.dot(h.astype(jnp.bfloat16), w_ref[2],
                preferred_element_type=jnp.float32), 0.0)

    # --- Output layer (no ReLU); only lanes 0..1 are real.
    y = jnp.dot(h.astype(jnp.bfloat16), w_ref[3],
                preferred_element_type=jnp.float32)
    o_ref[...] = y[:, :o_ref.shape[-1]].astype(o_ref.dtype)


def pack_params(params):
    """Pack 4 (W[in,out], b[out]) pairs into one bf16 [4, 128, 128] slab.

    Bias is folded into row 127 (the constant-1 lane of the activations);
    element [127, 127] = 1.0 on the first three layers so the constant lane
    survives each matmul + ReLU.
    """
    w_packed = jnp.zeros((4, LANES, LANES), jnp.float32)
    for i, (w, b) in enumerate(params):
        fin, fout = w.shape
        assert fin < LANES and fout <= LANES, "bias-folding needs fin < 128"
        w_packed = w_packed.at[i, :fin, :fout].set(w.astype(jnp.float32))
        w_packed = w_packed.at[i, LANES - 1, :fout].set(
            b.reshape(-1).astype(jnp.float32))
        if i < 3:
            w_packed = w_packed.at[i, LANES - 1, LANES - 1].set(1.0)
    return w_packed.astype(jnp.bfloat16)


@functools.partial(jax.jit, static_argnames=("block_b",))
def net_forward(x, w_packed, *, block_b=2048):
    B, in_dim = x.shape
    out_dim = 2

    # Batch tiling: tb multiple of 8 sublanes, batch padded up to a tile.
    b_pad = -(-B // 8) * 8
    tb = max(8, (min(block_b, b_pad) // 8) * 8)
    b_pad = -(-b_pad // tb) * tb
    grid = (b_pad // tb,)

    x_in = x.astype(jnp.float32)
    if b_pad != B:
        x_in = jnp.pad(x_in, ((0, b_pad - B), (0, 0)))

    flops = b_pad * (2 * in_dim * LANES + 3 * 2 * LANES * LANES)
    bytes_accessed = 4 * b_pad * (in_dim + out_dim) + 2 * 4 * LANES * LANES

    out = pl.pallas_call(
        mlp_kernel,
        out_shape=jax.ShapeDtypeStruct((b_pad, out_dim), jnp.float32),
        grid=grid,
        in_specs=[
            pl.BlockSpec((tb, in_dim), lambda i: (i, 0)),
            pl.BlockSpec((4, LANES, LANES), lambda i: (0, 0, 0)),  # resident
        ],
        out_specs=pl.BlockSpec((tb, out_dim), lambda i: (i, 0)),
        compiler_params=pltpu.CompilerParams(
            dimension_semantics=("parallel",),
        ),
        cost_estimate=pl.CostEstimate(
            flops=flops, transcendentals=0, bytes_accessed=bytes_accessed),
    )(x_in, w_packed)

    return out if b_pad == B else out[:B]


def init_linear(key, fan_in, fan_out):
    # Mimic PyTorch nn.Linear default init: U(-1/sqrt(fan_in), +1/sqrt(fan_in)).
    kw, kb = jax.random.split(key)
    bound = 1.0 / jnp.sqrt(jnp.float32(fan_in))
    # Stored as [in, out] (transposed vs. PyTorch) so the kernel computes x @ W.
    w = jax.random.uniform(kw, (fan_in, fan_out), jnp.float32, -bound, bound)
    b = jax.random.uniform(kb, (fan_out,), jnp.float32, -bound, bound)
    return w, b


if __name__ == "__main__":
    key = jax.random.PRNGKey(0)
    k_x, k1, k2, k3, k4 = jax.random.split(key, 5)

    B = 8
    x = jax.random.normal(k_x, (B, 2), jnp.float32)

    params = (
        init_linear(k1, 2, 64),
        init_linear(k2, 64, 64),
        init_linear(k3, 64, 64),
        init_linear(k4, 64, 2),
    )
    w_packed = pack_params(params)

    y = net_forward(x, w_packed)
    jax.block_until_ready(y)

    # Plain-JAX f32 reference (same math).  bf16 MXU operands (f32 accumulate)
    # loosen parity to roughly bf16 level, so use a loose tolerance.
    def ref(x, params):
        h = x
        for i, (w, b) in enumerate(params):
            h = h @ w + b
            if i < 3:
                h = jnp.maximum(h, 0.0)
        return h

    y_ref = ref(x, params)
    assert y.shape == (B, 2)
    assert jnp.allclose(y, y_ref, atol=3e-2, rtol=3e-2), (y, y_ref)

    print("KERNEL_OK")
</pallas_src>

<mosaic_0001>
module attributes {stable_mosaic.version = 11 : i64} {
  func.func @mlp_kernel(%arg0: i32, %arg1: memref<8x2xf32, #tpu.memory_space<vmem>>, %arg2: memref<4x128x128xbf16, #tpu.memory_space<vmem>>, %arg3: memref<8x2xf32, #tpu.memory_space<vmem>>) attributes {dimension_semantics = [#tpu.dimension_semantics<parallel>], iteration_bounds = array<i64: 1>, scalar_prefetch = 0 : i64, scratch_operands = 0 : i64, tpu.core_type = #tpu.core_type<tc>, window_params = [{transform_indices = @transform_0, window_bounds = array<i64: 8, 2>}, {pipeline_mode = #tpu.pipeline_mode<synchronous>, transform_indices = @transform_1, window_bounds = array<i64: 4, 128, 128>}, {transform_indices = @transform_2, window_bounds = array<i64: 8, 2>}]} {
    %c0 = arith.constant 0 : index
    %c0_0 = arith.constant 0 : index
    %0 = vector.load %arg1[%c0, %c0_0] : memref<8x2xf32, #tpu.memory_space<vmem>>, vector<8x2xf32>
    %c0_1 = arith.constant 0 : index
    %c0_2 = arith.constant 0 : index
    %c0_3 = arith.constant 0 : index
    %1 = vector.load %arg2[%c0_1, %c0_2, %c0_3] : memref<4x128x128xbf16, #tpu.memory_space<vmem>>, vector<1x128x128xbf16>
    %2 = vector.shape_cast %1 : vector<1x128x128xbf16> to vector<128x128xbf16>
    %3 = vector.extract_strided_slice %0 {offsets = [0, 0], sizes = [8, 1], strides = [1, 1]} : vector<8x2xf32> to vector<8x1xf32>
    %4 = vector.extract_strided_slice %2 {offsets = [0, 0], sizes = [1, 128], strides = [1, 1]} : vector<128x128xbf16> to vector<1x128xbf16>
    %5 = arith.extf %4 : vector<1x128xbf16> to vector<1x128xf32>
    %6 = vector.broadcast %3 : vector<8x1xf32> to vector<8x128xf32>
    %7 = vector.broadcast %5 : vector<1x128xf32> to vector<8x128xf32>
    %8 = arith.mulf %6, %7 : vector<8x128xf32>
    %9 = vector.extract_strided_slice %0 {offsets = [0, 1], sizes = [8, 1], strides = [1, 1]} : vector<8x2xf32> to vector<8x1xf32>
    %10 = vector.extract_strided_slice %2 {offsets = [1, 0], sizes = [1, 128], strides = [1, 1]} : vector<128x128xbf16> to vector<1x128xbf16>
    %11 = arith.extf %10 : vector<1x128xbf16> to vector<1x128xf32>
    %12 = vector.broadcast %9 : vector<8x1xf32> to vector<8x128xf32>
    %13 = vector.broadcast %11 : vector<1x128xf32> to vector<8x128xf32>
    %14 = arith.mulf %12, %13 : vector<8x128xf32>
    %15 = arith.addf %8, %14 : vector<8x128xf32>
    %16 = vector.extract_strided_slice %2 {offsets = [127, 0], sizes = [1, 128], strides = [1, 1]} : vector<128x128xbf16> to vector<1x128xbf16>
    %17 = arith.extf %16 : vector<1x128xbf16> to vector<1x128xf32>
    %18 = vector.broadcast %17 : vector<1x128xf32> to vector<8x128xf32>
    %19 = arith.addf %15, %18 : vector<8x128xf32>
    %cst = arith.constant 0.000000e+00 : f32
    %20 = vector.broadcast %cst : f32 to vector<8x128xf32>
    %21 = arith.maximumf %19, %20 : vector<8x128xf32>
    %22 = arith.truncf %21 : vector<8x128xf32> to vector<8x128xbf16>
    %c1 = arith.constant 1 : index
    %c0_4 = arith.constant 0 : index
    %c0_5 = arith.constant 0 : index
    %23 = vector.load %arg2[%c1, %c0_4, %c0_5] : memref<4x128x128xbf16, #tpu.memory_space<vmem>>, vector<1x128x128xbf16>
    %24 = vector.shape_cast %23 : vector<1x128x128xbf16> to vector<128x128xbf16>
    %cst_6 = arith.constant dense<0.000000e+00> : vector<8x128xf32>
    %25 = tpu.matmul %22, %24, %cst_6 {dimension_numbers = #tpu.dot_dimension_numbers<[1], [0], [0], [1], [0, 0, 1, 1], [], []>} : vector<8x128xbf16>, vector<128x128xbf16>, vector<8x128xf32> -> vector<8x128xf32>
    %cst_7 = arith.constant 0.000000e+00 : f32
    %26 = vector.broadcast %cst_7 : f32 to vector<8x128xf32>
    %27 = arith.maximumf %25, %26 : vector<8x128xf32>
    %28 = arith.truncf %27 : vector<8x128xf32> to vector<8x128xbf16>
    %c2 = arith.constant 2 : index
    %c0_8 = arith.constant 0 : index
    %c0_9 = arith.constant 0 : index
    %29 = vector.load %arg2[%c2, %c0_8, %c0_9] : memref<4x128x128xbf16, #tpu.memory_space<vmem>>, vector<1x128x128xbf16>
    %30 = vector.shape_cast %29 : vector<1x128x128xbf16> to vector<128x128xbf16>
    %cst_10 = arith.constant dense<0.000000e+00> : vector<8x128xf32>
    %31 = tpu.matmul %28, %30, %cst_10 {dimension_numbers = #tpu.dot_dimension_numbers<[1], [0], [0], [1], [0, 0, 1, 1], [], []>} : vector<8x128xbf16>, vector<128x128xbf16>, vector<8x128xf32> -> vector<8x128xf32>
    %cst_11 = arith.constant 0.000000e+00 : f32
    %32 = vector.broadcast %cst_11 : f32 to vector<8x128xf32>
    %33 = arith.maximumf %31, %32 : vector<8x128xf32>
    %34 = arith.truncf %33 : vector<8x128xf32> to vector<8x128xbf16>
    %c3 = arith.constant 3 : index
    %c0_12 = arith.constant 0 : index
    %c0_13 = arith.constant 0 : index
    %35 = vector.load %arg2[%c3, %c0_12, %c0_13] : memref<4x128x128xbf16, #tpu.memory_space<vmem>>, vector<1x128x128xbf16>
    %36 = vector.shape_cast %35 : vector<1x128x128xbf16> to vector<128x128xbf16>
    %cst_14 = arith.constant dense<0.000000e+00> : vector<8x128xf32>
    %37 = tpu.matmul %34, %36, %cst_14 {dimension_numbers = #tpu.dot_dimension_numbers<[1], [0], [0], [1], [0, 0, 1, 1], [], []>} : vector<8x128xbf16>, vector<128x128xbf16>, vector<8x128xf32> -> vector<8x128xf32>
    %38 = vector.extract_strided_slice %37 {offsets = [0, 0], sizes = [8, 2], strides = [1, 1]} : vector<8x128xf32> to vector<8x2xf32>
    %c0_15 = arith.constant 0 : index
    %c0_16 = arith.constant 0 : index
    %39 = vector.load %arg3[%c0_15, %c0_16] : memref<8x2xf32, #tpu.memory_space<vmem>>, vector<8x2xf32>
    tpu.vector_store %arg3[%c0_15, %c0_16], %38 {strides = array<i32>} : memref<8x2xf32, #tpu.memory_space<vmem>>, vector<8x2xf32>,
    return
  }
  func.func @transform_0(%arg0: i32) -> (i32, i32) {
    %c0_i32 = arith.constant 0 : i32
    %c0_i32_0 = arith.constant 0 : i32
    return %arg0, %c0_i32 : i32, i32
  }
  func.func @transform_1(%arg0: i32) -> (i32, i32, i32) {
    %c0_i32 = arith.constant 0 : i32
    %c0_i32_0 = arith.constant 0 : i32
    %c0_i32_1 = arith.constant 0 : i32
    %c0_i32_2 = arith.constant 0 : i32
    return %c0_i32, %c0_i32_0, %c0_i32_1 : i32, i32, i32
  }
  func.func @transform_2(%arg0: i32) -> (i32, i32) {
    %c0_i32 = arith.constant 0 : i32
    %c0_i32_0 = arith.constant 0 : i32
    return %arg0, %c0_i32 : i32, i32
  }
}

</mosaic_0001>

<bundles_post_ra>
// kernel: net_forward.1
= control target key start
LH: loop header
LB: loop body
LE: loop exit
PB: predicated region body
PF: predicated region fallthrough
CT: control target
= control target key end

     0   :  { %7 = vsyncpa [#allocation3], 0  ;;  %s552_s9 = smov [#allocation2]   ;;  %s622_s0 = inlined_call_operand.vmem [shape: f32[8,2], index: 0, kind: input, shape index: {}]   ;;  %s623_s1 = inlined_call_operand.hbm [shape: bf16[4,128,128], index: 1, kind: input, shape index: {}]   ;;  %s624_s2 = inlined_call_operand.vmem [shape: f32[8,2], index: 2, kind: output, shape index: {}]  }
   0x1   :  { %s15_s10 = sshll.u32 %s552_s9, 4  ;;  %s528_s13 = scalar_lea.hbm %s623_s1, 4096  ;;  %s16_s10 = int_to_ptr.vmem [resolvable:$true] %s15_s10 }
   0x2   :  { %p529_p0 = scmp.ne.s32.totalorder %s623_s1, %s528_s13  ;;  %p532_p1 = scmp.lt.u32.totalorder %s528_s13, %s623_s1 }
   0x4   :  { %p534_p2 = pnand %p532_p1, %p529_p0 }
   0x6   :  { %537 = shalt.err (!%p534_p2)
}
   0x7   :  { %s538_s18 = scalar_lea.vmem %s16_s10, 4096  ;;  %p543_p4 = scmp.lt.s32.totalorder %s16_s10, %s16_s10 }
   0x8   :  { %p539_p3 = scmp.ne.s32.totalorder %s16_s10, %s538_s18  ;;  %p544_p5 = scmp.lt.s32.totalorder %s538_s18, %s538_s18 }
   0xa   :  { %p545_p6 = por %p544_p5, %p543_p4 }
   0xc   :  { %p546_p7 = pnand %p545_p6, %p539_p3 }
   0xe   :  { %549 = shalt.err (!%p546_p7)
}
   0xf   :  { %s553_s19 = smov 64   ;;  %s554_s20 = smov 4  }
  0x10   :  { %21 = dma.hbm_to_vmem [thread:$0]  %s623_s1, 4096, %s16_s10, [#allocation3], %s553_s19, %s553_s19, %s554_s20  }
  0x11   :  { %550 = dma.done.wait [#allocation3], 4096  }
  0x12   :  { %551 = vsyncadd [#allocation3], 4294963200  ;;  %v555_v0 = vmov 0   ;;  %v556_v1 = vmov 0.0   ;;  %v26_v2 = vld [vmem:[%s622_s0] sm:$0xff]  ;;  %v505_v4 = vld [vmem:[#allocation2 + $0x48] sm:$0xff]   ;;  %v35_v19 = vlaneseq }
  0x13   :  { %502 = vset.pattern.permute.xlu0 %v555_v0  ;;  %435 = vmatprep.subr.bf16.mxu0 %v556_v1  ;;  %v504_v3 = vld [vmem:[#allocation2 + $0x40] sm:$0xff]   ;;  %v557_v5 = vmov 1   ;;  %v506_v6 = vld [vmem:[#allocation2 + $0x50] sm:$0xff]   ;;  %v507_v7 = vld [vmem:[#allocation2 + $0x58] sm:$0xff]   ;;  %vm558_vm0 = vmmov 0   ;;  %vm377_vm1 = vcmask 15360  }
  0x14   :  { %455 = vmatprep.subr.bf16.mxu1 %v556_v1  ;;  %32 = vperm.xlu0 %502, %v26_v2   ;;  %v508_v8 = vld [vmem:[#allocation2 + $0x60] sm:$0xff]   ;;  %v509_v10 = vld [vmem:[#allocation2 + $0x68] sm:$0xff]   ;;  %v514_v12 = vld [vmem:[#allocation2 + $0x90] sm:$0xff]   ;;  %v36_v20 = vshrl.u32 %v35_v19, 7 }
  0x15   :  { %436 = vmatpush3.bf16.msra.mxu0 %v504_v3  ;;  %451 = vmatprep.mubr.msk.bf16.mxu0 %vm558_vm0, %v556_v1  ;;  %v512_v9 = vld [vmem:[#allocation2 + $0x80] sm:$0xff]   ;;  %v513_v11 = vld [vmem:[#allocation2 + $0x88] sm:$0xff]   ;;  %v510_v13 = vld [vmem:[#allocation2 + $0x70] sm:$0xff]  }
  0x16   :  { %437 = vmatprep.subr.bf16.mxu0 %v556_v1  ;;  %471 = vmatprep.mubr.msk.bf16.mxu1 %vm558_vm0, %v556_v1  ;;  %v515_v14 = vld [vmem:[#allocation2 + $0x98] sm:$0xff]   ;;  %v516_v16 = vld [vmem:[#allocation2 + $0xa0] sm:$0xff]   ;;  %v517_v17 = vld [vmem:[#allocation2 + $0xa8] sm:$0xff]   ;;  %v37_v23 = vsub.s32 0, %v36_v20  ;;  %v46_v24 = vsub.s32 1, %v36_v20  ;;  %v53_v29 = vsub.s32 7, %v36_v20 }
  0x17   :  { %456 = vmatpush3.bf16.msra.mxu1 %v512_v9  ;;  %v511_v15 = vld [vmem:[#allocation2 + $0x78] sm:$0xff]   ;;  %v518_v18 = vld [vmem:[#allocation2 + $0xb0] sm:$0xff]   ;;  %v520_v39 = vld [vmem:[#allocation2 + $0xc0] sm:$0xff]  }
  0x18   :  { %503 = vset.pattern.permute.xlu0 %v557_v5  ;;  %457 = vmatprep.subr.bf16.mxu1 %v556_v1  ;;  %v27_v21 = vld [vmem:[#allocation2] ss:$60 sps:$4 sm:$0xff]   ;;  %v521_v40 = vld [vmem:[#allocation2 + $0xc8] sm:$0xff]   ;;  %v522_v41 = vld [vmem:[#allocation2 + $0xd0] sm:$0xff]  }
  0x19   :  { %41 = vperm.xlu0 %503, %v26_v2   ;;  %438 = vmatpush3.bf16.msra.mxu0 %v505_v4  ;;  %v29_v22 = vunpack.c.l.bf16 %v27_v21  ;;  %v50_v28 = vunpack.c.h.bf16 %v27_v21  ;;  %v519_v38 = vld [vmem:[#allocation2 + $0xb8] sm:$0xff]   ;;  %v524_v43 = vld [vmem:[#allocation2 + $0xe0] sm:$0xff]   ;;  %v525_v44 = vld [vmem:[#allocation2 + $0xe8] sm:$0xff]  }
  0x1a   :  { %439 = vmatprep.subr.bf16.mxu0 %v556_v1  ;;  %v523_v42 = vld [vmem:[#allocation2 + $0xd8] sm:$0xff]   ;;  %v526_v45 = vld [vmem:[#allocation2 + $0xf0] sm:$0xff]  }
  0x1b   :  { %458 = vmatpush3.bf16.msra.mxu1 %v513_v11  ;;  %v38_v26 = vrot.slane %v29_v22, %v37_v23  ;;  %v47_v27 = vrot.slane %v29_v22, %v46_v24  ;;  %v54_v32 = vrot.slane %v50_v28, %v53_v29  ;;  %v527_v52 = vld [vmem:[#allocation2 + $0xf8] sm:$0xff]  }
  0x1c   :  { %459 = vmatprep.subr.bf16.mxu1 %v556_v1 }
  0x1d   :  { %440 = vmatpush3.bf16.msra.mxu0 %v506_v6 }
  0x1e   :  { %441 = vmatprep.subr.bf16.mxu0 %v556_v1 }
  0x1f   :  { %460 = vmatpush3.bf16.msra.mxu1 %v514_v12 }
  0x20   :  { %461 = vmatprep.subr.bf16.mxu1 %v556_v1 }
  0x21   :  { %442 = vmatpush3.bf16.msra.mxu0 %v507_v7 }
  0x22   :  { %443 = vmatprep.subr.bf16.mxu0 %v556_v1 }
  0x23   :  { %462 = vmatpush3.bf16.msra.mxu1 %v515_v14 }
  0x24   :  { %463 = vmatprep.subr.bf16.mxu1 %v556_v1 }
  0x25   :  { %444 = vmatpush3.bf16.msra.mxu0 %v508_v8 }
  0x26   :  { %445 = vmatprep.subr.bf16.mxu0 %v556_v1 }
  0x27   :  { %464 = vmatpush3.bf16.msra.mxu1 %v516_v16 }
  0x28   :  { %465 = vmatprep.subr.bf16.mxu1 %v556_v1 }
  0x29   :  { %446 = vmatpush3.bf16.msra.mxu0 %v509_v10 }
  0x2a   :  { %447 = vmatprep.subr.bf16.mxu0 %v556_v1 }
  0x2b   :  { %466 = vmatpush3.bf16.msra.mxu1 %v517_v17 }
  0x2c   :  { %467 = vmatprep.subr.bf16.mxu1 %v556_v1 }
  0x2d   :  { %448 = vmatpush3.bf16.msra.mxu0 %v510_v13 }
  0x2e   :  { %449 = vmatprep.subr.bf16.mxu0 %v556_v1 }
  0x2f   :  { %468 = vmatpush3.bf16.msra.mxu1 %v518_v18 }
  0x30   :  { %469 = vmatprep.subr.bf16.mxu1 %v556_v1 }
  0x31   :  { %450 = vmatpush3.bf16.msra.mxu0 %v511_v15 }
  0x32   :  { %475 = vmatprep.subr.bf16.mxu0 %v556_v1 }
  0x33   :  { %470 = vmatpush3.bf16.msra.mxu1 %v519_v38 }
  0x93   :  { %v33_v25 = vpop.permute.xlu0 %32 }
  0x94   :  { %v39_v31 = vmul.f32 %v38_v26, %v33_v25 }
  0x98   :  { %v42_v30 = vpop.permute.xlu0 %41 }
  0x99   :  { %v48_v33 = vmul.f32 %v47_v27, %v42_v30 }
  0x9b   :  { %v49_v34 = vadd.f32 %v48_v33, %v39_v31 }
  0x9d   :  { %v55_v35 = vadd.f32 %v54_v32, %v49_v34 }
  0x9f   :  { %v56_v36 = vmax.f32 %v55_v35, 0.0 }
  0xa1   :  { %v57_v37 = vpack.c.bf16 %v56_v36, %v56_v36 }
  0xa3   :  { %452 = vmatmul.mubr.bf16.vlgmr.msra.gmra.mrb[0].mxu0 %v57_v37 }
  0xa4   :  { %491 = vmatprep.mubr.msk.bf16.mxu0 %vm558_vm0, %v556_v1  ;;  %476 = vmatpush3.bf16.msra.mxu0 %v520_v39 }
  0xa5   :  { %477 = vmatprep.subr.bf16.mxu0 %v556_v1 }
  0xa8   :  { %478 = vmatpush3.bf16.msra.mxu0 %v521_v40 }
  0xa9   :  { %479 = vmatprep.subr.bf16.mxu0 %v556_v1 }
  0xac   :  { %480 = vmatpush3.bf16.msra.mxu0 %v522_v41 }
  0xad   :  { %481 = vmatprep.subr.bf16.mxu0 %v556_v1 }
  0xb0   :  { %482 = vmatpush3.bf16.msra.mxu0 %v523_v42 }
  0xb1   :  { %483 = vmatprep.subr.bf16.mxu0 %v556_v1 }
  0xb4   :  { %484 = vmatpush3.bf16.msra.mxu0 %v524_v43 }
  0xb5   :  { %485 = vmatprep.subr.bf16.mxu0 %v556_v1 }
  0xb8   :  { %486 = vmatpush3.bf16.msra.mxu0 %v525_v44 }
  0xb9   :  { %487 = vmatprep.subr.bf16.mxu0 %v556_v1 }
  0xbc   :  { %488 = vmatpush3.bf16.msra.mxu0 %v526_v45 }
  0xbd   :  { %489 = vmatprep.subr.bf16.mxu0 %v556_v1 }
  0xc0   :  { %490 = vmatpush3.bf16.msra.mxu0 %v527_v52 }
 0x176   :  { %v157_v46 = vpop.f32.mrb[0].mxu0 }
 0x177   :  { %v163_v47 = vmax.f32 %v157_v46, 0.0  ;;  %v453_v48 = vpop.f32.mrb[1].mxu0 }
 0x178   :  { %v160_v49 = vpop.f32.mrb[2].mxu0 }
 0x179   :  { %v164_v50 = vpack.c.bf16 %v163_v47, %v163_v47  ;;  %v454_v51 = vpop.f32.mrb[3].mxu0 }
 0x17b   :  { %472 = vmatmul.mubr.bf16.vlgmr.msra.gmra.mrb[0].mxu1 %v164_v50 }
 0x24e   :  { %v264_v53 = vpop.f32.mrb[0].mxu1 }
 0x24f   :  { %v270_v54 = vmax.f32 %v264_v53, 0.0  ;;  %v473_v55 = vpop.f32.mrb[1].mxu1 }
 0x250   :  { %v267_v56 = vpop.f32.mrb[2].mxu1 }
 0x251   :  { %v271_v57 = vpack.c.bf16 %v270_v54, %v270_v54  ;;  %v474_v58 = vpop.f32.mrb[3].mxu1 }
 0x253   :  { %492 = vmatmul.mubr.bf16.vlgmr.msra.gmra.mrb[4].mxu0 %v271_v57 }
 0x326   :  { %v371_v59 = vpop.f32.mrb[4].mxu0 }
 0x327   :  { %378 = vst.msk [vmem:[%s624_s2] sm:$0xff] %vm377_vm1, %v371_v59  ;;  %v493_v60 = vpop.f32.mrb[5].mxu0 }
 0x328   :  { %v374_v61 = vpop.f32.mrb[6].mxu0 }
 0x329   :  { %v494_v62 = vpop.f32.mrb[7].mxu0 }
 0x32a   :  { %383 = vsyncpa [#allocation3], 1 }

</bundles_post_ra>
